<compile_context>
chip_gen: v7x
topology: tpu7x:2x2x1
jax: 0.10.0
libtpu: 0.0.40
codegen_flags: <defaults>
</compile_context>

<pallas_src>
import functools

import jax
import jax.numpy as jnp
from jax.experimental import pallas as pl
from jax.experimental.pallas import tpu as pltpu


def _round_up(n, m):
    return ((n + m - 1) // m) * m


def _vmem_capacity_bytes():
    """Physical VMEM per TensorCore; conservative fallback if unavailable."""
    try:
        cap = int(pltpu.get_tpu_info().vmem_capacity_bytes)
        if cap > 0:
            return cap
    except Exception:
        pass
    return 64 * 1024 * 1024  # v7x per-core VMEM (smallest of v5e/v6e/v7x)


def _cross_kernel(*refs, packed):
    """One row-tile of the DCN cross network.

    packed=True : refs = (x, W, b, seg, out); x is (bm, 128) with P = 128 // D
                  logical batch rows folded into each physical row, W/b are
                  (L, 128) lane-tiled, seg is the (128, 128) bf16 block-diagonal
                  ones matrix used for the per-logical-row reduce + broadcast.
    packed=False: refs = (x, W, b, out); one logical row per physical row.
    """
    if packed:
        x_ref, w_ref, b_ref, seg_ref, o_ref = refs
        seg = seg_ref[...]                          # bf16; DMA'd once (const index_map)
    else:
        x_ref, w_ref, b_ref, o_ref = refs
        seg = None

    x0 = x_ref[...].astype(jnp.float32)             # (bm, Dp)
    # Hoist the tiny W/b loads out of the unrolled layer loop.
    w_all = w_ref[...].astype(jnp.float32)          # (L, Dp)
    b_all = b_ref[...].astype(jnp.float32)          # (L, Dp)
    num_layers = w_all.shape[0]

    xl = x0
    for i in range(num_layers):                     # static, unrolled layer loop
        w = w_all[i:i + 1, :]                       # (1, Dp)
        bias = b_all[i:i + 1, :]                    # (1, Dp)
        xw_lane = xl * w                            # (bm, Dp)
        if seg is None:
            # One logical row per physical row: plain lane reduction.
            xw = jnp.sum(xw_lane, axis=-1, keepdims=True)            # (bm, 1)
        else:
            # Segmented reduce + broadcast on the otherwise idle MXU, as an
            # exact-ish 2-pass bf16 hi/lo split with f32 accumulation (fast on
            # v5e's bf16-only MXU; seg is exactly representable as 0/1).
            hi = xw_lane.astype(jnp.bfloat16)
            lo = (xw_lane - hi.astype(jnp.float32)).astype(jnp.bfloat16)
            xw = (jnp.dot(hi, seg, preferred_element_type=jnp.float32)
                  + jnp.dot(lo, seg, preferred_element_type=jnp.float32))
        xl = x0 * xw + bias + xl
    o_ref[...] = xl.astype(o_ref.dtype)


def _cross_plain(x, W, b):
    """Collapsed-form pure-JAX path for tiny (< pack factor) row tails."""
    x0 = x.astype(jnp.float32)
    xl = x0
    for i in range(W.shape[0]):
        xw = jnp.sum(xl * W[i].astype(jnp.float32)[None, :], axis=-1, keepdims=True)
        xl = x0 * xw + b[i].astype(jnp.float32)[None, :] + xl
    return xl


def cross_layer(x, W, b, *, block_rows=2048, io_dtype=None):
    """DCN CrossLayer forward.  x: (B, D); W, b: (L, D).  Returns (B, D).

    io_dtype: optional narrower HBM I/O dtype (e.g. jnp.bfloat16) — roughly
    halves HBM traffic on this bandwidth-bound kernel; accumulation stays f32.
    """
    B, D = x.shape
    L = W.shape[0]
    assert W.shape == (L, D) and b.shape == (L, D)

    x_k = x if io_dtype is None else x.astype(io_dtype)
    itemsize = jnp.dtype(x_k.dtype).itemsize
    mult = max(8, 32 // itemsize)        # sublane packing: f32 -> 8, bf16 -> 16, int8 -> 32

    # ---- Lane-dense repack: fold P = 128 // D logical rows into one 128-lane
    # physical row (free row-major regroup).  The <= P-1 tail rows (B % P) are
    # handled in plain JAX instead of pad-copying the whole input.
    pack = (D < 128) and (128 % D == 0)
    P = (128 // D) if pack else 1
    B_main = (B // P) * P

    out_main = None
    if B_main > 0:
        if pack:
            rows, Dp = B_main // P, 128
            x_main = x_k if B_main == B else x_k[:B_main]
            x_in = x_main.reshape(rows, Dp)            # contiguous row-major regroup
            W_in = jnp.tile(W, (1, P))                 # (L, 128)
            b_in = jnp.tile(b, (1, P))                 # (L, 128)
            gidx = jnp.arange(Dp, dtype=jnp.int32) // D
            seg = (gidx[:, None] == gidx[None, :]).astype(jnp.bfloat16)   # (128, 128)
            operands = (x_in, W_in, b_in, seg)
        else:
            rows, Dp = B_main, D
            x_in, W_in, b_in = x_k, W, b
            operands = (x_in, W_in, b_in)

        # ---- Row tiling: HBM-streaming kernel -> target >= 4 fairly even grid
        # steps (>= 2 per TensorCore on v7x), tiles capped so the double-buffered
        # in/out blocks *plus* the f32 compute intermediates fit in VMEM.
        vmem_cap = _vmem_capacity_bytes()
        vmem_limit = min(vmem_cap // 2, 48 * 1024 * 1024)
        bytes_per_row = Dp * (4 * itemsize + 24)       # 2x(in+out) bufs + ~6 f32 temps
        bm_cap = max(mult, ((vmem_limit // 3) // bytes_per_row) // mult * mult)

        if rows <= mult:
            bm = rows                                  # full-extent block (tiny input)
        else:
            bm = min(block_rows, bm_cap)
            bm = min(bm, _round_up(pl.cdiv(rows, 4), mult))
            bm = _round_up(max(bm, mult), mult)
        grid = (pl.cdiv(rows, bm),)                    # ragged last tile is masked

        if pack:
            flops = L * rows * (4 * Dp * Dp + 8 * Dp)  # 2 bf16 MXU passes + VPU terms
            seg_bytes = Dp * Dp * 2
        else:
            flops = L * rows * 8 * Dp
            seg_bytes = 0
        cost = pl.CostEstimate(
            flops=flops,
            transcendentals=0,
            bytes_accessed=(2 * rows * Dp * itemsize
                            + 2 * L * Dp * jnp.dtype(W.dtype).itemsize
                            + seg_bytes),
        )

        in_specs = [
            pl.BlockSpec((bm, Dp), lambda i: (i, 0)),      # x row tile
            pl.BlockSpec((L, Dp), lambda i: (0, 0)),       # full W (VMEM-resident)
            pl.BlockSpec((L, Dp), lambda i: (0, 0)),       # full b (VMEM-resident)
        ]
        if pack:
            in_specs.append(pl.BlockSpec((Dp, Dp), lambda i: (0, 0)))   # seg, DMA'd once

        out = pl.pallas_call(
            functools.partial(_cross_kernel, packed=pack),
            out_shape=jax.ShapeDtypeStruct((rows, Dp), x_k.dtype),
            grid_spec=pltpu.PrefetchScalarGridSpec(
                num_scalar_prefetch=0,
                grid=grid,
                in_specs=in_specs,
                out_specs=pl.BlockSpec((bm, Dp), lambda i: (i, 0)),
            ),
            compiler_params=pltpu.CompilerParams(
                dimension_semantics=("parallel",),
                vmem_limit_bytes=vmem_limit,
            ),
            cost_estimate=cost,
        )(*operands)
        out_main = out.reshape(B_main, D) if pack else out

    if B_main == B:
        return out_main
    tail = _cross_plain(x_k[B_main:], W, b).astype(x_k.dtype)
    if out_main is None:
        return tail
    return jnp.concatenate([out_main, tail], axis=0)


def cross_layer_ref(x, W, b):
    """Pure-JAX reference mirroring the PyTorch forward exactly."""
    hp = jax.lax.Precision.HIGHEST
    x0 = x[:, :, None]                                    # (B, D, 1)
    xl = x
    for i in range(W.shape[0]):
        _xl = xl[:, None, :]                              # (B, 1, D)
        x0l = jnp.einsum('bik,bkj->bij', x0, _xl, precision=hp)   # (B, D, D)
        w = W[i][None, :, None]                           # (1, D, 1)
        cross = jnp.einsum('bij,bjk->bik', x0l, w, precision=hp)[:, :, 0]
        xl = cross + b[i][None, :] + xl
    return xl


if __name__ == "__main__":
    LAYER_NUMS = 3
    key = jax.random.PRNGKey(0)

    # (B, D): small primary case + packed-tail / no-pack / multi-tile coverage.
    configs = [(16, 32), (23, 32), (20, 128), (1024, 32)]
    for (B, D) in configs:
        key, kx, kw = jax.random.split(key, 3)
        x = jax.random.normal(kx, (B, D), dtype=jnp.float32)
        # torch.randn(embed_dim, 1) per layer -> stacked (LAYER_NUMS, D)
        W = jax.random.normal(kw, (LAYER_NUMS, D), dtype=jnp.float32)
        # torch.zeros(embed_dim, 1) per layer
        b = jnp.zeros((LAYER_NUMS, D), dtype=jnp.float32)

        out = jax.block_until_ready(cross_layer(x, W, b))
        ref = cross_layer_ref(x, W, b)
        assert out.shape == (B, D) and out.dtype == x.dtype
        rel = jnp.max(jnp.abs(out - ref)) / jnp.maximum(jnp.max(jnp.abs(ref)), 1.0)
        assert rel < 5e-3, f"mismatch vs reference B={B} D={D}: rel_err={rel}"

    # Optional bf16 I/O fast path (halves HBM traffic; f32 accumulation inside).
    B, D = 512, 32
    key, kx, kw = jax.random.split(key, 3)
    x = jax.random.normal(kx, (B, D), dtype=jnp.float32)
    W = jax.random.normal(kw, (LAYER_NUMS, D), dtype=jnp.float32)
    b = jnp.zeros((LAYER_NUMS, D), dtype=jnp.float32)
    out16 = jax.block_until_ready(cross_layer(x, W, b, io_dtype=jnp.bfloat16))
    ref16 = cross_layer_ref(x.astype(jnp.bfloat16).astype(jnp.float32), W, b)
    rel16 = (jnp.max(jnp.abs(out16.astype(jnp.float32) - ref16))
             / jnp.maximum(jnp.max(jnp.abs(ref16)), 1.0))
    assert out16.shape == (B, D) and rel16 < 2e-2, f"bf16 mismatch: rel_err={rel16}"

    print("KERNEL_OK")
</pallas_src>

<mosaic_0001>
module attributes {stable_mosaic.version = 11 : i64} {
  func.func @_cross_kernel(%arg0: i32, %arg1: memref<4x128xf32, #tpu.memory_space<vmem>>, %arg2: memref<3x128xf32, #tpu.memory_space<vmem>>, %arg3: memref<3x128xf32, #tpu.memory_space<vmem>>, %arg4: memref<128x128xbf16, #tpu.memory_space<vmem>>, %arg5: memref<4x128xf32, #tpu.memory_space<vmem>>) attributes {dimension_semantics = [#tpu.dimension_semantics<parallel>], iteration_bounds = array<i64: 1>, scalar_prefetch = 0 : i64, scratch_operands = 0 : i64, tpu.core_type = #tpu.core_type<tc>, window_params = [{transform_indices = @transform_0, window_bounds = array<i64: 4, 128>}, {pipeline_mode = #tpu.pipeline_mode<synchronous>, transform_indices = @transform_1, window_bounds = array<i64: 3, 128>}, {pipeline_mode = #tpu.pipeline_mode<synchronous>, transform_indices = @transform_2, window_bounds = array<i64: 3, 128>}, {pipeline_mode = #tpu.pipeline_mode<synchronous>, transform_indices = @transform_3, window_bounds = array<i64: 128, 128>}, {transform_indices = @transform_4, window_bounds = array<i64: 4, 128>}]} {
    %c0 = arith.constant 0 : index
    %c0_0 = arith.constant 0 : index
    %0 = vector.load %arg4[%c0, %c0_0] : memref<128x128xbf16, #tpu.memory_space<vmem>>, vector<128x128xbf16>
    %c0_1 = arith.constant 0 : index
    %c0_2 = arith.constant 0 : index
    %1 = vector.load %arg1[%c0_1, %c0_2] : memref<4x128xf32, #tpu.memory_space<vmem>>, vector<4x128xf32>
    %c0_3 = arith.constant 0 : index
    %c0_4 = arith.constant 0 : index
    %2 = vector.load %arg2[%c0_3, %c0_4] : memref<3x128xf32, #tpu.memory_space<vmem>>, vector<3x128xf32>
    %c0_5 = arith.constant 0 : index
    %c0_6 = arith.constant 0 : index
    %3 = vector.load %arg3[%c0_5, %c0_6] : memref<3x128xf32, #tpu.memory_space<vmem>>, vector<3x128xf32>
    %4 = vector.extract_strided_slice %2 {offsets = [0, 0], sizes = [1, 128], strides = [1, 1]} : vector<3x128xf32> to vector<1x128xf32>
    %5 = vector.extract_strided_slice %3 {offsets = [0, 0], sizes = [1, 128], strides = [1, 1]} : vector<3x128xf32> to vector<1x128xf32>
    %6 = vector.broadcast %4 : vector<1x128xf32> to vector<4x128xf32>
    %7 = arith.mulf %1, %6 : vector<4x128xf32>
    %8 = arith.truncf %7 : vector<4x128xf32> to vector<4x128xbf16>
    %9 = arith.extf %8 : vector<4x128xbf16> to vector<4x128xf32>
    %10 = arith.subf %7, %9 : vector<4x128xf32>
    %11 = arith.truncf %10 : vector<4x128xf32> to vector<4x128xbf16>
    %cst = arith.constant dense<0.000000e+00> : vector<4x128xf32>
    %12 = tpu.matmul %8, %0, %cst {dimension_numbers = #tpu.dot_dimension_numbers<[1], [0], [0], [1], [0, 0, 1, 1], [], []>} : vector<4x128xbf16>, vector<128x128xbf16>, vector<4x128xf32> -> vector<4x128xf32>
    %cst_7 = arith.constant dense<0.000000e+00> : vector<4x128xf32>
    %13 = tpu.matmul %11, %0, %cst_7 {dimension_numbers = #tpu.dot_dimension_numbers<[1], [0], [0], [1], [0, 0, 1, 1], [], []>} : vector<4x128xbf16>, vector<128x128xbf16>, vector<4x128xf32> -> vector<4x128xf32>
    %14 = arith.addf %12, %13 : vector<4x128xf32>
    %15 = arith.mulf %1, %14 : vector<4x128xf32>
    %16 = vector.broadcast %5 : vector<1x128xf32> to vector<4x128xf32>
    %17 = arith.addf %15, %16 : vector<4x128xf32>
    %18 = arith.addf %17, %1 : vector<4x128xf32>
    %19 = vector.extract_strided_slice %2 {offsets = [1, 0], sizes = [1, 128], strides = [1, 1]} : vector<3x128xf32> to vector<1x128xf32>
    %20 = vector.extract_strided_slice %3 {offsets = [1, 0], sizes = [1, 128], strides = [1, 1]} : vector<3x128xf32> to vector<1x128xf32>
    %21 = vector.broadcast %19 : vector<1x128xf32> to vector<4x128xf32>
    %22 = arith.mulf %18, %21 : vector<4x128xf32>
    %23 = arith.truncf %22 : vector<4x128xf32> to vector<4x128xbf16>
    %24 = arith.extf %23 : vector<4x128xbf16> to vector<4x128xf32>
    %25 = arith.subf %22, %24 : vector<4x128xf32>
    %26 = arith.truncf %25 : vector<4x128xf32> to vector<4x128xbf16>
    %cst_8 = arith.constant dense<0.000000e+00> : vector<4x128xf32>
    %27 = tpu.matmul %23, %0, %cst_8 {dimension_numbers = #tpu.dot_dimension_numbers<[1], [0], [0], [1], [0, 0, 1, 1], [], []>} : vector<4x128xbf16>, vector<128x128xbf16>, vector<4x128xf32> -> vector<4x128xf32>
    %cst_9 = arith.constant dense<0.000000e+00> : vector<4x128xf32>
    %28 = tpu.matmul %26, %0, %cst_9 {dimension_numbers = #tpu.dot_dimension_numbers<[1], [0], [0], [1], [0, 0, 1, 1], [], []>} : vector<4x128xbf16>, vector<128x128xbf16>, vector<4x128xf32> -> vector<4x128xf32>
    %29 = arith.addf %27, %28 : vector<4x128xf32>
    %30 = arith.mulf %1, %29 : vector<4x128xf32>
    %31 = vector.broadcast %20 : vector<1x128xf32> to vector<4x128xf32>
    %32 = arith.addf %30, %31 : vector<4x128xf32>
    %33 = arith.addf %32, %18 : vector<4x128xf32>
    %34 = vector.extract_strided_slice %2 {offsets = [2, 0], sizes = [1, 128], strides = [1, 1]} : vector<3x128xf32> to vector<1x128xf32>
    %35 = vector.extract_strided_slice %3 {offsets = [2, 0], sizes = [1, 128], strides = [1, 1]} : vector<3x128xf32> to vector<1x128xf32>
    %36 = vector.broadcast %34 : vector<1x128xf32> to vector<4x128xf32>
    %37 = arith.mulf %33, %36 : vector<4x128xf32>
    %38 = arith.truncf %37 : vector<4x128xf32> to vector<4x128xbf16>
    %39 = arith.extf %38 : vector<4x128xbf16> to vector<4x128xf32>
    %40 = arith.subf %37, %39 : vector<4x128xf32>
    %41 = arith.truncf %40 : vector<4x128xf32> to vector<4x128xbf16>
    %cst_10 = arith.constant dense<0.000000e+00> : vector<4x128xf32>
    %42 = tpu.matmul %38, %0, %cst_10 {dimension_numbers = #tpu.dot_dimension_numbers<[1], [0], [0], [1], [0, 0, 1, 1], [], []>} : vector<4x128xbf16>, vector<128x128xbf16>, vector<4x128xf32> -> vector<4x128xf32>
    %cst_11 = arith.constant dense<0.000000e+00> : vector<4x128xf32>
    %43 = tpu.matmul %41, %0, %cst_11 {dimension_numbers = #tpu.dot_dimension_numbers<[1], [0], [0], [1], [0, 0, 1, 1], [], []>} : vector<4x128xbf16>, vector<128x128xbf16>, vector<4x128xf32> -> vector<4x128xf32>
    %44 = arith.addf %42, %43 : vector<4x128xf32>
    %45 = arith.mulf %1, %44 : vector<4x128xf32>
    %46 = vector.broadcast %35 : vector<1x128xf32> to vector<4x128xf32>
    %47 = arith.addf %45, %46 : vector<4x128xf32>
    %48 = arith.addf %47, %33 : vector<4x128xf32>
    %c0_12 = arith.constant 0 : index
    %c0_13 = arith.constant 0 : index
    %49 = vector.load %arg5[%c0_12, %c0_13] : memref<4x128xf32, #tpu.memory_space<vmem>>, vector<4x128xf32>
    tpu.vector_store %arg5[%c0_12, %c0_13], %48 {strides = array<i32>} : memref<4x128xf32, #tpu.memory_space<vmem>>, vector<4x128xf32>,
    return
  }
  func.func @transform_0(%arg0: i32) -> (i32, i32) {
    %c0_i32 = arith.constant 0 : i32
    %c0_i32_0 = arith.constant 0 : i32
    return %arg0, %c0_i32 : i32, i32
  }
  func.func @transform_1(%arg0: i32) -> (i32, i32) {
    %c0_i32 = arith.constant 0 : i32
    %c0_i32_0 = arith.constant 0 : i32
    %c0_i32_1 = arith.constant 0 : i32
    return %c0_i32, %c0_i32_0 : i32, i32
  }
  func.func @transform_2(%arg0: i32) -> (i32, i32) {
    %c0_i32 = arith.constant 0 : i32
    %c0_i32_0 = arith.constant 0 : i32
    %c0_i32_1 = arith.constant 0 : i32
    return %c0_i32, %c0_i32_0 : i32, i32
  }
  func.func @transform_3(%arg0: i32) -> (i32, i32) {
    %c0_i32 = arith.constant 0 : i32
    %c0_i32_0 = arith.constant 0 : i32
    %c0_i32_1 = arith.constant 0 : i32
    return %c0_i32, %c0_i32_0 : i32, i32
  }
  func.func @transform_4(%arg0: i32) -> (i32, i32) {
    %c0_i32 = arith.constant 0 : i32
    %c0_i32_0 = arith.constant 0 : i32
    return %arg0, %c0_i32 : i32, i32
  }
}

</mosaic_0001>

<bundles_post_ra>
// kernel: tpu_custom_call.1
= control target key start
LH: loop header
LB: loop body
LE: loop exit
PB: predicated region body
PF: predicated region fallthrough
CT: control target
= control target key end

     0   :  { %9 = vsyncpa [#allocation3], 0  ;;  %s963_s0 = inlined_call_operand.hbm [shape: f32[4,128], index: 0, kind: input, shape index: {}]   ;;  %s964_s1 = inlined_call_operand.hbm [shape: f32[3,128], index: 1, kind: input, shape index: {}]   ;;  %s965_s2 = inlined_call_operand.vmem [shape: f32[3,128], index: 2, kind: input, shape index: {}]   ;;  %s966_s3 = inlined_call_operand.hbm [shape: bf16[128,128], index: 3, kind: input, shape index: {}]   ;;  %s967_s4 = inlined_call_operand.hbm [shape: f32[4,128], index: 4, kind: output, shape index: {}]  }
   0x1   :  { %10 = vsyncpa [#allocation6], 0 }
   0x2   :  { %11 = vsyncpa [#allocation4], 0  ;;  %s729_s15 = smov [#allocation5]   ;;  %s730_s17 = smov [#allocation2]  }
   0x3   :  { %s28_s16 = sshll.u32 %s729_s15, 4  ;;  %s18_s18 = sshll.u32 %s730_s17, 4  ;;  %s29_s16 = int_to_ptr.vmem [resolvable:$true] %s28_s16  ;;  %s19_s18 = int_to_ptr.vmem [resolvable:$true] %s18_s18 }
   0x4   :  { %s635_s21 = scalar_lea.hbm %s964_s1, 64 }
   0x5   :  { %p636_p0 = scmp.ne.s32.totalorder %s964_s1, %s635_s21  ;;  %p639_p1 = scmp.lt.u32.totalorder %s635_s21, %s964_s1 }
   0x7   :  { %p641_p2 = pnand %p639_p1, %p636_p0 }
   0x9   :  { %644 = shalt.err (!%p641_p2)
}
   0xa   :  { %s645_s26 = scalar_lea.vmem %s29_s16, 64  ;;  %p650_p4 = scmp.lt.s32.totalorder %s29_s16, %s29_s16 }
   0xb   :  { %p646_p3 = scmp.ne.s32.totalorder %s29_s16, %s645_s26  ;;  %p651_p5 = scmp.lt.s32.totalorder %s645_s26, %s645_s26 }
   0xd   :  { %p652_p6 = por %p651_p5, %p650_p4 }
   0xf   :  { %p653_p7 = pnand %p652_p6, %p646_p3 }
  0x11   :  { %656 = shalt.err (!%p653_p7)
}
  0x12   :  { %31 = dma.hbm_to_vmem [thread:$0]  %s964_s1, 64, %s29_s16, [#allocation6]  }
  0x13   :  { %s657_s5 = scalar_lea.hbm %s963_s0, 64 }
  0x14   :  { %p658_p8 = scmp.ne.s32.totalorder %s963_s0, %s657_s5  ;;  %p661_p9 = scmp.lt.u32.totalorder %s657_s5, %s963_s0 }
  0x16   :  { %p663_p10 = pnand %p661_p9, %p658_p8 }
  0x18   :  { %666 = shalt.err (!%p663_p10)
}
  0x19   :  { %s667_s10 = scalar_lea.vmem %s19_s18, 64  ;;  %p672_p12 = scmp.lt.s32.totalorder %s19_s18, %s19_s18 }
  0x1a   :  { %p668_p11 = scmp.ne.s32.totalorder %s19_s18, %s667_s10  ;;  %p673_p13 = scmp.lt.s32.totalorder %s667_s10, %s667_s10 }
  0x1c   :  { %p674_p0 = por %p673_p13, %p672_p12 }
  0x1e   :  { %p675_p1 = pnand %p674_p0, %p668_p11 }
  0x20   :  { %678 = shalt.err (!%p675_p1)
}
  0x21   :  { %21 = dma.hbm_to_vmem [thread:$0]  %s963_s0, 64, %s19_s18, [#allocation3]  }
  0x22   :  { %s731_s12 = smov [#allocation7]   ;;  %s679_s16 = scalar_lea.hbm %s966_s3, 1024 }
  0x23   :  { %s39_s13 = sshll.u32 %s731_s12, 4  ;;  %p680_p2 = scmp.ne.s32.totalorder %s966_s3, %s679_s16  ;;  %s40_s13 = int_to_ptr.vmem [resolvable:$true] %s39_s13 }
  0x24   :  { %p683_p3 = scmp.lt.u32.totalorder %s679_s16, %s966_s3 }
  0x26   :  { %p685_p4 = pnand %p683_p3, %p680_p2 }
  0x28   :  { %688 = shalt.err (!%p685_p4)
}
  0x29   :  { %s689_s22 = scalar_lea.vmem %s40_s13, 1024  ;;  %p694_p6 = scmp.lt.s32.totalorder %s40_s13, %s40_s13 }
  0x2a   :  { %p690_p5 = scmp.ne.s32.totalorder %s40_s13, %s689_s22  ;;  %p695_p7 = scmp.lt.s32.totalorder %s689_s22, %s689_s22 }
  0x2c   :  { %p696_p8 = por %p695_p7, %p694_p6 }
  0x2e   :  { %p697_p9 = pnand %p696_p8, %p690_p5 }
  0x30   :  { %700 = shalt.err (!%p697_p9)
}
  0x31   :  { %s732_s0 = smov 64   ;;  %s733_s18 = smov 4  }
  0x32   :  { %45 = dma.hbm_to_vmem [thread:$0]  %s966_s3, 1024, %s40_s13, [#allocation6], %s732_s0, %s732_s0, %s733_s18  }
  0x33   :  { %723 = dma.done.wait [#allocation3], 64  }
  0x34   :  { %724 = vsyncadd [#allocation3], 4294967232 }
  0x35   :  { %725 = dma.done.wait [#allocation6], 1088  }
  0x36   :  { %726 = vsyncadd [#allocation6], 4294966208  ;;  %v734_v0 = vmov 0.0   ;;  %vm735_vm0 = vmmov 0   ;;  %v75_v1 = vlaneseq  ;;  %v804_v2 = vld [vmem:[#allocation7] sm:$0xff]   ;;  %v810_v4 = vld [vmem:[#allocation7 + $0x8] sm:$0xff]  }
  0x37   :  { %490 = vmatprep.subr.bf16.mxu1 %v734_v0  ;;  %510 = vmatprep.subr.bf16.mxu0 %v734_v0  ;;  %v817_v6 = vld [vmem:[#allocation7 + $0x10] sm:$0xff]   ;;  %v821_v7 = vld [vmem:[#allocation5] sm:$0x7]  ;;  %v830_v10 = vld [vmem:[#allocation2] sm:$0xf] }
  0x38   :  { %506 = vmatprep.mubr.msk.bf16.mxu1 %vm735_vm0, %v734_v0  ;;  %526 = vmatprep.mubr.msk.bf16.mxu0 %vm735_vm0, %v734_v0  ;;  %v806_v3 = vshrl.u32 %v75_v1, 7  ;;  %v828_v9 = vld [vmem:[#allocation7 + $0x18] sm:$0xff]   ;;  %v837_v12 = vld [vmem:[#allocation7 + $0x20] sm:$0xff]   ;;  %v843_v14 = vld [vmem:[#allocation7 + $0x28] sm:$0xff]  }
  0x39   :  { %491 = vmatpush3.bf16.msra.mxu1 %v804_v2  ;;  %511 = vmatpush3.bf16.msra.mxu0 %v804_v2  ;;  %v849_v16 = vld [vmem:[#allocation7 + $0x30] sm:$0xff]   ;;  %v855_v18 = vld [vmem:[#allocation7 + $0x38] sm:$0xff]  }
  0x3a   :  { %492 = vmatprep.subr.bf16.mxu1 %v734_v0  ;;  %512 = vmatprep.subr.bf16.mxu0 %v734_v0  ;;  %v77_v5 = vsub.s32 0, %v806_v3  ;;  %v902_v20 = vld [vmem:[%s965_s2] sm:$0x7]  ;;  %v221_v25 = vsub.s32 1, %v806_v3  ;;  %v317_v42 = vsub.s32 2, %v806_v3  ;;  %s736_s2 = smov [#allocation8]  }
  0x3b   :  { %s418_s26 = sshll.u32 %s736_s2, 4  ;;  %s419_s26 = int_to_ptr.vmem [resolvable:$true] %s418_s26 }
  0x3c   :  { %v78_v8 = vrot.slane %v821_v7, %v77_v5  ;;  %v216_v24 = vrot.slane %v902_v20, %v77_v5  ;;  %v222_v34 = vrot.slane %v821_v7, %v221_v25  ;;  %v312_v41 = vrot.slane %v902_v20, %v221_v25  ;;  %s701_s27 = scalar_lea.vmem %s419_s26, 64  ;;  %p706_p11 = scmp.lt.s32.totalorder %s419_s26, %s419_s26 }
  0x3d   :  { %493 = vmatpush3.bf16.msra.mxu1 %v810_v4  ;;  %513 = vmatpush3.bf16.msra.mxu0 %v810_v4  ;;  %v318_v48 = vrot.slane %v821_v7, %v317_v42  ;;  %v408_v56 = vrot.slane %v902_v20, %v317_v42  ;;  %p702_p10 = scmp.ne.s32.totalorder %s419_s26, %s701_s27  ;;  %p707_p12 = scmp.lt.s32.totalorder %s701_s27, %s701_s27 }
  0x3e   :  { %494 = vmatprep.subr.bf16.mxu1 %v734_v0  ;;  %514 = vmatprep.subr.bf16.mxu0 %v734_v0  ;;  %v79_v11 = vmul.f32 %v78_v8, %v830_v10 }
  0x3f   :  { %p708_p13 = por %p707_p12, %p706_p11 }
  0x40   :  { %v80_v13 = vpack.c.bf16 %v79_v11, %v79_v11 }
  0x41   :  { %495 = vmatpush3.bf16.msra.mxu1 %v817_v6  ;;  %515 = vmatpush3.bf16.msra.mxu0 %v817_v6  ;;  %p709_p0 = pnand %p708_p13, %p702_p10 }
  0x42   :  { %496 = vmatprep.subr.bf16.mxu1 %v734_v0  ;;  %516 = vmatprep.subr.bf16.mxu0 %v734_v0  ;;  %v81_v15 = vunpack.c.l.bf16 %v80_v13 }
  0x44   :  { %v82_v17 = vsub.f32 %v79_v11, %v81_v15 }
  0x45   :  { %497 = vmatpush3.bf16.msra.mxu1 %v828_v9  ;;  %517 = vmatpush3.bf16.msra.mxu0 %v828_v9 }
  0x46   :  { %498 = vmatprep.subr.bf16.mxu1 %v734_v0  ;;  %518 = vmatprep.subr.bf16.mxu0 %v734_v0  ;;  %v83_v19 = vpack.c.bf16 %v82_v17, %v82_v17 }
  0x49   :  { %499 = vmatpush3.bf16.msra.mxu1 %v837_v12  ;;  %519 = vmatpush3.bf16.msra.mxu0 %v837_v12 }
  0x4a   :  { %500 = vmatprep.subr.bf16.mxu1 %v734_v0  ;;  %520 = vmatprep.subr.bf16.mxu0 %v734_v0 }
  0x4d   :  { %501 = vmatpush3.bf16.msra.mxu1 %v843_v14  ;;  %521 = vmatpush3.bf16.msra.mxu0 %v843_v14 }
  0x4e   :  { %502 = vmatprep.subr.bf16.mxu1 %v734_v0  ;;  %522 = vmatprep.subr.bf16.mxu0 %v734_v0 }
  0x51   :  { %503 = vmatpush3.bf16.msra.mxu1 %v849_v16  ;;  %523 = vmatpush3.bf16.msra.mxu0 %v849_v16 }
  0x52   :  { %504 = vmatprep.subr.bf16.mxu1 %v734_v0  ;;  %524 = vmatprep.subr.bf16.mxu0 %v734_v0 }
  0x55   :  { %505 = vmatpush3.bf16.msra.mxu1 %v855_v18  ;;  %525 = vmatpush3.bf16.msra.mxu0 %v855_v18 }
  0x56   :  { %530 = vmatprep.subr.bf16.mxu1 %v734_v0  ;;  %570 = vmatprep.subr.bf16.mxu0 %v734_v0 }
  0x58   :  { %507 = vmatmul.mubr.bf16.vlgmr.msra.gmra.mrb[0].mxu1 %v83_v19  ;;  %527 = vmatmul.mubr.bf16.vlgmr.msra.gmra.mrb[0].mxu0 %v80_v13 }
  0x59   :  { %531 = vmatpush3.bf16.msra.mxu1 %v804_v2  ;;  %546 = vmatprep.mubr.msk.bf16.mxu1 %vm735_vm0, %v734_v0 }
  0x5a   :  { %532 = vmatprep.subr.bf16.mxu1 %v734_v0  ;;  %571 = vmatpush3.bf16.msra.mxu0 %v804_v2 }
  0x5b   :  { %572 = vmatprep.subr.bf16.mxu0 %v734_v0  ;;  %586 = vmatprep.mubr.msk.bf16.mxu0 %vm735_vm0, %v734_v0 }
  0x5d   :  { %533 = vmatpush3.bf16.msra.mxu1 %v810_v4 }
  0x5e   :  { %534 = vmatprep.subr.bf16.mxu1 %v734_v0  ;;  %573 = vmatpush3.bf16.msra.mxu0 %v810_v4 }
  0x5f   :  { %574 = vmatprep.subr.bf16.mxu0 %v734_v0 }
  0x61   :  { %535 = vmatpush3.bf16.msra.mxu1 %v817_v6 }
  0x62   :  { %536 = vmatprep.subr.bf16.mxu1 %v734_v0  ;;  %575 = vmatpush3.bf16.msra.mxu0 %v817_v6 }
  0x63   :  { %576 = vmatprep.subr.bf16.mxu0 %v734_v0 }
  0x65   :  { %537 = vmatpush3.bf16.msra.mxu1 %v828_v9 }
  0x66   :  { %538 = vmatprep.subr.bf16.mxu1 %v734_v0  ;;  %577 = vmatpush3.bf16.msra.mxu0 %v828_v9 }
  0x67   :  { %578 = vmatprep.subr.bf16.mxu0 %v734_v0 }
  0x69   :  { %539 = vmatpush3.bf16.msra.mxu1 %v837_v12 }
  0x6a   :  { %540 = vmatprep.subr.bf16.mxu1 %v734_v0  ;;  %579 = vmatpush3.bf16.msra.mxu0 %v837_v12 }
  0x6b   :  { %580 = vmatprep.subr.bf16.mxu0 %v734_v0 }
  0x6d   :  { %541 = vmatpush3.bf16.msra.mxu1 %v843_v14 }
  0x6e   :  { %542 = vmatprep.subr.bf16.mxu1 %v734_v0  ;;  %581 = vmatpush3.bf16.msra.mxu0 %v843_v14 }
  0x6f   :  { %582 = vmatprep.subr.bf16.mxu0 %v734_v0 }
  0x71   :  { %543 = vmatpush3.bf16.msra.mxu1 %v849_v16 }
  0x72   :  { %544 = vmatprep.subr.bf16.mxu1 %v734_v0  ;;  %583 = vmatpush3.bf16.msra.mxu0 %v849_v16 }
  0x73   :  { %584 = vmatprep.subr.bf16.mxu0 %v734_v0 }
  0x75   :  { %545 = vmatpush3.bf16.msra.mxu1 %v855_v18 }
  0x76   :  { %550 = vmatprep.subr.bf16.mxu1 %v734_v0  ;;  %585 = vmatpush3.bf16.msra.mxu0 %v855_v18 }
  0x77   :  { %590 = vmatprep.subr.bf16.mxu0 %v734_v0 }
 0x12b   :  { %v166_v21 = vpop.f32.mrb[0].mxu1  ;;  %v206_v22 = vpop.f32.mrb[0].mxu0 }
 0x12c   :  { %v207_v23 = vadd.f32 %v206_v22, %v166_v21  ;;  %v508_v26 = vpop.f32.mrb[1].mxu1  ;;  %v528_v27 = vpop.f32.mrb[1].mxu0 }
 0x12d   :  { %v169_v28 = vpop.f32.mrb[2].mxu1  ;;  %v209_v29 = vpop.f32.mrb[2].mxu0 }
 0x12e   :  { %v212_v30 = vmul.f32 %v207_v23, %v830_v10  ;;  %v509_v31 = vpop.f32.mrb[3].mxu1  ;;  %v529_v32 = vpop.f32.mrb[3].mxu0 }
 0x130   :  { %v217_v33 = vadd.f32 %v216_v24, %v212_v30 }
 0x132   :  { %v218_v35 = vadd.f32 %v217_v33, %v830_v10 }
 0x134   :  { %v223_v36 = vmul.f32 %v222_v34, %v218_v35 }
 0x136   :  { %v224_v37 = vpack.c.bf16 %v223_v36, %v223_v36 }
 0x138   :  { %v225_v38 = vunpack.c.l.bf16 %v224_v37 }
 0x13a   :  { %v226_v39 = vsub.f32 %v223_v36, %v225_v38 }
 0x13c   :  { %v227_v40 = vpack.c.bf16 %v226_v39, %v226_v39 }
 0x13e   :  { %547 = vmatmul.mubr.bf16.vlgmr.msra.gmra.mrb[4].mxu1 %v227_v40 }
 0x13f   :  { %551 = vmatpush3.bf16.msra.mxu1 %v804_v2  ;;  %566 = vmatprep.mubr.msk.bf16.mxu1 %vm735_vm0, %v734_v0 }
 0x140   :  { %552 = vmatprep.subr.bf16.mxu1 %v734_v0 }
 0x143   :  { %553 = vmatpush3.bf16.msra.mxu1 %v810_v4 }
 0x144   :  { %554 = vmatprep.subr.bf16.mxu1 %v734_v0 }
 0x147   :  { %555 = vmatpush3.bf16.msra.mxu1 %v817_v6 }
 0x148   :  { %556 = vmatprep.subr.bf16.mxu1 %v734_v0 }
 0x14b   :  { %557 = vmatpush3.bf16.msra.mxu1 %v828_v9 }
 0x14c   :  { %558 = vmatprep.subr.bf16.mxu1 %v734_v0 }
 0x14f   :  { %559 = vmatpush3.bf16.msra.mxu1 %v837_v12 }
 0x150   :  { %560 = vmatprep.subr.bf16.mxu1 %v734_v0 }
 0x153   :  { %561 = vmatpush3.bf16.msra.mxu1 %v843_v14 }
 0x154   :  { %562 = vmatprep.subr.bf16.mxu1 %v734_v0 }
 0x157   :  { %563 = vmatpush3.bf16.msra.mxu1 %v849_v16 }
 0x158   :  { %564 = vmatprep.subr.bf16.mxu1 %v734_v0 }
 0x15b   :  { %565 = vmatpush3.bf16.msra.mxu1 %v855_v18 }
 0x15e   :  { %567 = vmatmul.mubr.bf16.vlgmr.msra.gmra.mrb[4].mxu1 %v224_v37 }
 0x231   :  { %v302_v43 = vpop.f32.mrb[4].mxu1 }
 0x232   :  { %v308_v44 = vmul.f32 %v302_v43, %v830_v10  ;;  %v568_v45 = vpop.f32.mrb[5].mxu1 }
 0x233   :  { %v305_v46 = vpop.f32.mrb[6].mxu1 }
 0x234   :  { %v313_v47 = vadd.f32 %v312_v41, %v308_v44  ;;  %v569_v49 = vpop.f32.mrb[7].mxu1 }
 0x236   :  { %v314_v50 = vadd.f32 %v313_v47, %v218_v35 }
 0x238   :  { %v319_v51 = vmul.f32 %v318_v48, %v314_v50 }
 0x23a   :  { %v320_v52 = vpack.c.bf16 %v319_v51, %v319_v51 }
 0x23c   :  { %v321_v53 = vunpack.c.l.bf16 %v320_v52 }
 0x23e   :  { %v322_v54 = vsub.f32 %v319_v51, %v321_v53 }
 0x240   :  { %v323_v55 = vpack.c.bf16 %v322_v54, %v322_v54 }
 0x242   :  { %587 = vmatmul.mubr.bf16.vlgmr.msra.gmra.mrb[4].mxu0 %v323_v55 }
 0x243   :  { %591 = vmatpush3.bf16.msra.mxu0 %v804_v2  ;;  %606 = vmatprep.mubr.msk.bf16.mxu0 %vm735_vm0, %v734_v0 }
 0x244   :  { %592 = vmatprep.subr.bf16.mxu0 %v734_v0 }
 0x247   :  { %593 = vmatpush3.bf16.msra.mxu0 %v810_v4 }
 0x248   :  { %594 = vmatprep.subr.bf16.mxu0 %v734_v0 }
 0x24b   :  { %595 = vmatpush3.bf16.msra.mxu0 %v817_v6 }
 0x24c   :  { %596 = vmatprep.subr.bf16.mxu0 %v734_v0 }
 0x24f   :  { %597 = vmatpush3.bf16.msra.mxu0 %v828_v9 }
 0x250   :  { %598 = vmatprep.subr.bf16.mxu0 %v734_v0 }
 0x253   :  { %599 = vmatpush3.bf16.msra.mxu0 %v837_v12 }
 0x254   :  { %600 = vmatprep.subr.bf16.mxu0 %v734_v0 }
 0x257   :  { %601 = vmatpush3.bf16.msra.mxu0 %v843_v14 }
 0x258   :  { %602 = vmatprep.subr.bf16.mxu0 %v734_v0 }
 0x25b   :  { %603 = vmatpush3.bf16.msra.mxu0 %v849_v16 }
 0x25c   :  { %604 = vmatprep.subr.bf16.mxu0 %v734_v0 }
 0x25f   :  { %605 = vmatpush3.bf16.msra.mxu0 %v855_v18 }
 0x262   :  { %607 = vmatmul.mubr.bf16.vlgmr.msra.gmra.mrb[4].mxu0 %v320_v52 }
 0x335   :  { %v398_v57 = vpop.f32.mrb[4].mxu0 }
 0x336   :  { %v404_v58 = vmul.f32 %v398_v57, %v830_v10  ;;  %v608_v59 = vpop.f32.mrb[5].mxu0 }
 0x337   :  { %v401_v60 = vpop.f32.mrb[6].mxu0 }
 0x338   :  { %v409_v61 = vadd.f32 %v408_v56, %v404_v58  ;;  %v609_v62 = vpop.f32.mrb[7].mxu0 }
 0x33a   :  { %v410_v63 = vadd.f32 %v409_v61, %v314_v50 }
 0x33c   :  { %411 = vst [vmem:[#allocation8] sm:$0xf] %v410_v63 }
 0x33d   :  { %712 = shalt.err (!%p709_p0)
}
 0x33e   :  { %s713_s30 = scalar_lea.hbm %s967_s4, 64 }
 0x33f   :  { %p714_p1 = scmp.ne.s32.totalorder %s967_s4, %s713_s30  ;;  %p717_p2 = scmp.lt.u32.totalorder %s713_s30, %s967_s4 }
 0x341   :  { %p719_p3 = pnand %p717_p2, %p714_p1 }
 0x343   :  { %722 = shalt.err (!%p719_p3)
}
 0x344   :  { %421 = dma.vmem_to_hbm [thread:$0]  %s419_s26, 64, %s967_s4, [#allocation4]  }
 0x345   :  { %727 = dma.done.wait [#allocation4], 64  }
 0x346   :  { %728 = vsyncadd [#allocation4], 4294967232 }
 0x347   :  { %425 = vsyncpa [#allocation3], 1 }
 0x348   :  { %426 = vsyncpa [#allocation6], 1 }
 0x349   :  { %427 = vsyncpa [#allocation4], 1 }

</bundles_post_ra>
